<compile_context>
chip_gen: v6e
topology: v6e:2x2x1
jax: 0.10.0
libtpu: 0.0.40
codegen_flags: <defaults>
</compile_context>

<pallas_src>
import jax
import jax.numpy as jnp
from jax.experimental import pallas as pl
from jax.experimental.pallas import tpu as pltpu

HIDDEN = 64


def _mlp_kernel(x_ref, w1_ref, b1_ref, w2_ref, b2_ref, w3_ref, b3_ref, o_ref):
    # x_ref: (TILE_B, in_dim) bf16; weights bf16; biases (1, N) f32.
    x = x_ref[...]

    # layer1 + ReLU  (bf16 MXU inputs, f32 accumulate, f32 elementwise)
    h1 = jnp.dot(x, w1_ref[...], preferred_element_type=jnp.float32)
    h1 = jnp.maximum(h1 + b1_ref[...], 0.0)

    # layer2 + ReLU
    h2 = jnp.dot(h1.astype(jnp.bfloat16), w2_ref[...],
                 preferred_element_type=jnp.float32)
    h2 = jnp.maximum(h2 + b2_ref[...], 0.0)

    # layer3 (no activation)
    out = jnp.dot(h2.astype(jnp.bfloat16), w3_ref[...],
                  preferred_element_type=jnp.float32)
    o_ref[...] = (out + b3_ref[...]).astype(o_ref.dtype)


def mlp_forward(x, params, tile_b=256):
    """Run the fused 3-layer MLP with a batch-tiled Pallas grid.

    x: (B, in_dim) float32
    params: dict with w1 (in_dim,64), b1 (64,), w2 (64,64), b2 (64,),
            w3 (64,out_dim), b3 (out_dim,)   (all float32)
    """
    w1 = params["w1"].astype(jnp.bfloat16)
    w2 = params["w2"].astype(jnp.bfloat16)
    w3 = params["w3"].astype(jnp.bfloat16)
    b1 = params["b1"].astype(jnp.float32).reshape(1, -1)
    b2 = params["b2"].astype(jnp.float32).reshape(1, -1)
    b3 = params["b3"].astype(jnp.float32).reshape(1, -1)

    B, in_dim = x.shape
    out_dim = w3.shape[1]

    # Clamp the batch tile; tile_b == B (full dim) is always legal, otherwise
    # 256 is a multiple of the bf16 (16,128) sublane tiling and of the MXU M.
    tile_b = min(tile_b, B)
    grid = (pl.cdiv(B, tile_b),)

    flops = 2 * B * (in_dim * HIDDEN + HIDDEN * HIDDEN + HIDDEN * out_dim)
    bytes_accessed = (B * in_dim * 2                      # x (bf16)
                      + (w1.size + w2.size + w3.size) * 2  # weights (bf16)
                      + (b1.size + b2.size + b3.size) * 4  # biases (f32)
                      + B * out_dim * 4)                   # output (f32)

    return pl.pallas_call(
        _mlp_kernel,
        out_shape=jax.ShapeDtypeStruct((B, out_dim), jnp.float32),
        grid=grid,
        in_specs=[
            pl.BlockSpec((tile_b, in_dim), lambda i: (i, 0)),     # x: batch-tiled
            pl.BlockSpec((in_dim, HIDDEN), lambda i: (0, 0)),     # w1: resident
            pl.BlockSpec((1, HIDDEN), lambda i: (0, 0)),          # b1
            pl.BlockSpec((HIDDEN, HIDDEN), lambda i: (0, 0)),     # w2
            pl.BlockSpec((1, HIDDEN), lambda i: (0, 0)),          # b2
            pl.BlockSpec((HIDDEN, out_dim), lambda i: (0, 0)),    # w3
            pl.BlockSpec((1, out_dim), lambda i: (0, 0)),         # b3
        ],
        out_specs=pl.BlockSpec((tile_b, out_dim), lambda i: (i, 0)),
        compiler_params=pltpu.CompilerParams(
            dimension_semantics=("parallel",),
            vmem_limit_bytes=64 << 20,
        ),
        cost_estimate=pl.CostEstimate(
            flops=flops, transcendentals=0, bytes_accessed=bytes_accessed),
    )(x.astype(jnp.bfloat16), w1, b1, w2, b2, w3, b3)


def init_params(key, in_dim, out_dim, hidden=HIDDEN):
    """Deterministic init mimicking nn.Linear's uniform(-1/sqrt(fan_in), 1/sqrt(fan_in))."""
    ks = jax.random.split(key, 6)

    def linear(kw, kb, fan_in, fan_out):
        bound = 1.0 / jnp.sqrt(fan_in)
        w = jax.random.uniform(kw, (fan_in, fan_out), jnp.float32, -bound, bound)
        b = jax.random.uniform(kb, (fan_out,), jnp.float32, -bound, bound)
        return w, b

    w1, b1 = linear(ks[0], ks[1], in_dim, hidden)
    w2, b2 = linear(ks[2], ks[3], hidden, hidden)
    w3, b3 = linear(ks[4], ks[5], hidden, out_dim)
    return {"w1": w1, "b1": b1, "w2": w2, "b2": b2, "w3": w3, "b3": b3}


def mlp_reference_f32(x, p):
    h1 = jnp.maximum(x @ p["w1"] + p["b1"], 0.0)
    h2 = jnp.maximum(h1 @ p["w2"] + p["b2"], 0.0)
    return h2 @ p["w3"] + p["b3"]


def mlp_reference_bf16(x, p):
    """Mirrors the kernel numerics: bf16 matmul operands, f32 accumulation."""
    xb = x.astype(jnp.bfloat16)
    w1 = p["w1"].astype(jnp.bfloat16)
    w2 = p["w2"].astype(jnp.bfloat16)
    w3 = p["w3"].astype(jnp.bfloat16)
    h1 = jnp.dot(xb, w1, preferred_element_type=jnp.float32) + p["b1"]
    h1 = jnp.maximum(h1, 0.0).astype(jnp.bfloat16)
    h2 = jnp.dot(h1, w2, preferred_element_type=jnp.float32) + p["b2"]
    h2 = jnp.maximum(h2, 0.0).astype(jnp.bfloat16)
    return jnp.dot(h2, w3, preferred_element_type=jnp.float32) + p["b3"]


if __name__ == "__main__":
    key = jax.random.PRNGKey(0)
    k_x, k_p = jax.random.split(key)

    # Small but tiling-exercising shapes: grid = (512 / 256,) = (2,)
    batch, in_dim, out_dim = 512, 32, 16
    x = jax.random.normal(k_x, (batch, in_dim), jnp.float32)
    params = init_params(k_p, in_dim, out_dim)

    out = mlp_forward(x, params)
    out = jax.block_until_ready(out)
    assert out.shape == (batch, out_dim)

    # Exact-numerics reference (bf16 matmul inputs, f32 accumulation).
    ref_bf16 = mlp_reference_bf16(x, params)
    assert jnp.allclose(out, ref_bf16, atol=1e-3, rtol=1e-3), \
        "mismatch vs bf16-matched reference"

    # Loose check vs the pure-f32 PyTorch-equivalent math.
    ref_f32 = mlp_reference_f32(x, params)
    assert jnp.allclose(out, ref_f32, atol=5e-2, rtol=5e-2), \
        "mismatch vs f32 reference"

    print("KERNEL_OK")
</pallas_src>

<mosaic_0001>
module attributes {stable_mosaic.version = 11 : i64} {
  func.func @_mlp_kernel(%arg0: i32, %arg1: memref<256x32xbf16, #tpu.memory_space<vmem>>, %arg2: memref<32x64xbf16, #tpu.memory_space<vmem>>, %arg3: memref<1x64xf32, #tpu.memory_space<vmem>>, %arg4: memref<64x64xbf16, #tpu.memory_space<vmem>>, %arg5: memref<1x64xf32, #tpu.memory_space<vmem>>, %arg6: memref<64x16xbf16, #tpu.memory_space<vmem>>, %arg7: memref<1x16xf32, #tpu.memory_space<vmem>>, %arg8: memref<256x16xf32, #tpu.memory_space<vmem>>) attributes {dimension_semantics = [#tpu.dimension_semantics<parallel>], iteration_bounds = array<i64: 2>, scalar_prefetch = 0 : i64, scratch_operands = 0 : i64, tpu.core_type = #tpu.core_type<tc>, window_params = [{transform_indices = @transform_0, window_bounds = array<i64: 256, 32>}, {pipeline_mode = #tpu.pipeline_mode<synchronous>, transform_indices = @transform_1, window_bounds = array<i64: 32, 64>}, {pipeline_mode = #tpu.pipeline_mode<synchronous>, transform_indices = @transform_2, window_bounds = array<i64: 1, 64>}, {pipeline_mode = #tpu.pipeline_mode<synchronous>, transform_indices = @transform_3, window_bounds = array<i64: 64, 64>}, {pipeline_mode = #tpu.pipeline_mode<synchronous>, transform_indices = @transform_4, window_bounds = array<i64: 1, 64>}, {pipeline_mode = #tpu.pipeline_mode<synchronous>, transform_indices = @transform_5, window_bounds = array<i64: 64, 16>}, {pipeline_mode = #tpu.pipeline_mode<synchronous>, transform_indices = @transform_6, window_bounds = array<i64: 1, 16>}, {transform_indices = @transform_7, window_bounds = array<i64: 256, 16>}]} {
    %c0 = arith.constant 0 : index
    %c0_0 = arith.constant 0 : index
    %0 = vector.load %arg1[%c0, %c0_0] : memref<256x32xbf16, #tpu.memory_space<vmem>>, vector<256x32xbf16>
    %c0_1 = arith.constant 0 : index
    %c0_2 = arith.constant 0 : index
    %1 = vector.load %arg2[%c0_1, %c0_2] : memref<32x64xbf16, #tpu.memory_space<vmem>>, vector<32x64xbf16>
    %cst = arith.constant dense<0.000000e+00> : vector<256x64xf32>
    %2 = tpu.matmul %0, %1, %cst {dimension_numbers = #tpu.dot_dimension_numbers<[1], [0], [0], [1], [0, 0, 1, 1], [], []>} : vector<256x32xbf16>, vector<32x64xbf16>, vector<256x64xf32> -> vector<256x64xf32>
    %c0_3 = arith.constant 0 : index
    %c0_4 = arith.constant 0 : index
    %3 = vector.load %arg3[%c0_3, %c0_4] : memref<1x64xf32, #tpu.memory_space<vmem>>, vector<1x64xf32>
    %4 = vector.broadcast %3 : vector<1x64xf32> to vector<256x64xf32>
    %5 = arith.addf %2, %4 : vector<256x64xf32>
    %cst_5 = arith.constant 0.000000e+00 : f32
    %6 = vector.broadcast %cst_5 : f32 to vector<256x64xf32>
    %7 = arith.maximumf %5, %6 : vector<256x64xf32>
    %8 = arith.truncf %7 : vector<256x64xf32> to vector<256x64xbf16>
    %c0_6 = arith.constant 0 : index
    %c0_7 = arith.constant 0 : index
    %9 = vector.load %arg4[%c0_6, %c0_7] : memref<64x64xbf16, #tpu.memory_space<vmem>>, vector<64x64xbf16>
    %cst_8 = arith.constant dense<0.000000e+00> : vector<256x64xf32>
    %10 = tpu.matmul %8, %9, %cst_8 {dimension_numbers = #tpu.dot_dimension_numbers<[1], [0], [0], [1], [0, 0, 1, 1], [], []>} : vector<256x64xbf16>, vector<64x64xbf16>, vector<256x64xf32> -> vector<256x64xf32>
    %c0_9 = arith.constant 0 : index
    %c0_10 = arith.constant 0 : index
    %11 = vector.load %arg5[%c0_9, %c0_10] : memref<1x64xf32, #tpu.memory_space<vmem>>, vector<1x64xf32>
    %12 = vector.broadcast %11 : vector<1x64xf32> to vector<256x64xf32>
    %13 = arith.addf %10, %12 : vector<256x64xf32>
    %cst_11 = arith.constant 0.000000e+00 : f32
    %14 = vector.broadcast %cst_11 : f32 to vector<256x64xf32>
    %15 = arith.maximumf %13, %14 : vector<256x64xf32>
    %16 = arith.truncf %15 : vector<256x64xf32> to vector<256x64xbf16>
    %c0_12 = arith.constant 0 : index
    %c0_13 = arith.constant 0 : index
    %17 = vector.load %arg6[%c0_12, %c0_13] : memref<64x16xbf16, #tpu.memory_space<vmem>>, vector<64x16xbf16>
    %cst_14 = arith.constant dense<0.000000e+00> : vector<256x16xf32>
    %18 = tpu.matmul %16, %17, %cst_14 {dimension_numbers = #tpu.dot_dimension_numbers<[1], [0], [0], [1], [0, 0, 1, 1], [], []>} : vector<256x64xbf16>, vector<64x16xbf16>, vector<256x16xf32> -> vector<256x16xf32>
    %c0_15 = arith.constant 0 : index
    %c0_16 = arith.constant 0 : index
    %19 = vector.load %arg7[%c0_15, %c0_16] : memref<1x16xf32, #tpu.memory_space<vmem>>, vector<1x16xf32>
    %20 = vector.broadcast %19 : vector<1x16xf32> to vector<256x16xf32>
    %21 = arith.addf %18, %20 : vector<256x16xf32>
    %c0_17 = arith.constant 0 : index
    %c0_18 = arith.constant 0 : index
    %22 = vector.load %arg8[%c0_17, %c0_18] : memref<256x16xf32, #tpu.memory_space<vmem>>, vector<256x16xf32>
    tpu.vector_store %arg8[%c0_17, %c0_18], %21 {strides = array<i32>} : memref<256x16xf32, #tpu.memory_space<vmem>>, vector<256x16xf32>,
    return
  }
  func.func @transform_0(%arg0: i32) -> (i32, i32) {
    %c0_i32 = arith.constant 0 : i32
    %c0_i32_0 = arith.constant 0 : i32
    return %arg0, %c0_i32 : i32, i32
  }
  func.func @transform_1(%arg0: i32) -> (i32, i32) {
    %c0_i32 = arith.constant 0 : i32
    %c0_i32_0 = arith.constant 0 : i32
    %c0_i32_1 = arith.constant 0 : i32
    return %c0_i32, %c0_i32_0 : i32, i32
  }
  func.func @transform_2(%arg0: i32) -> (i32, i32) {
    %c0_i32 = arith.constant 0 : i32
    %c0_i32_0 = arith.constant 0 : i32
    %c0_i32_1 = arith.constant 0 : i32
    return %c0_i32, %c0_i32_0 : i32, i32
  }
  func.func @transform_3(%arg0: i32) -> (i32, i32) {
    %c0_i32 = arith.constant 0 : i32
    %c0_i32_0 = arith.constant 0 : i32
    %c0_i32_1 = arith.constant 0 : i32
    return %c0_i32, %c0_i32_0 : i32, i32
  }
  func.func @transform_4(%arg0: i32) -> (i32, i32) {
    %c0_i32 = arith.constant 0 : i32
    %c0_i32_0 = arith.constant 0 : i32
    %c0_i32_1 = arith.constant 0 : i32
    return %c0_i32, %c0_i32_0 : i32, i32
  }
  func.func @transform_5(%arg0: i32) -> (i32, i32) {
    %c0_i32 = arith.constant 0 : i32
    %c0_i32_0 = arith.constant 0 : i32
    %c0_i32_1 = arith.constant 0 : i32
    return %c0_i32, %c0_i32_0 : i32, i32
  }
  func.func @transform_6(%arg0: i32) -> (i32, i32) {
    %c0_i32 = arith.constant 0 : i32
    %c0_i32_0 = arith.constant 0 : i32
    %c0_i32_1 = arith.constant 0 : i32
    return %c0_i32, %c0_i32_0 : i32, i32
  }
  func.func @transform_7(%arg0: i32) -> (i32, i32) {
    %c0_i32 = arith.constant 0 : i32
    %c0_i32_0 = arith.constant 0 : i32
    return %arg0, %c0_i32 : i32, i32
  }
}

</mosaic_0001>

<bundles_post_ra>
// kernel: tpu_custom_call.1
= control target key start
LH: loop header
LB: loop body
LE: loop exit
PB: predicated region body
PF: predicated region fallthrough
CT: control target
= control target key end

     0   :  { %s1658_s24 = smov 0   ;;  %s1961_s0 = inlined_call_operand.vmem [shape: bf16[512,32], index: 0, kind: input, shape index: {}]   ;;  %s1962_s1 = inlined_call_operand.vmem [shape: bf16[32,64], index: 1, kind: input, shape index: {}]   ;;  %s1963_s2 = inlined_call_operand.vmem [shape: f32[1,64], index: 2, kind: input, shape index: {}]   ;;  %s1964_s3 = inlined_call_operand.vmem [shape: bf16[64,64], index: 3, kind: input, shape index: {}]   ;;  %s1965_s4 = inlined_call_operand.vmem [shape: f32[1,64], index: 4, kind: input, shape index: {}]   ;;  %s1966_s5 = inlined_call_operand.vmem [shape: bf16[64,16], index: 5, kind: input, shape index: {}]   ;;  %s1967_s6 = inlined_call_operand.vmem [shape: f32[1,16], index: 6, kind: input, shape index: {}]   ;;  %s1968_s7 = inlined_call_operand.vmem [shape: f32[512,16], index: 7, kind: output, shape index: {}]  }
   0x1 LB: > { %s1310_s25 = sadd.s32 4294967295, %s1616_s24   ;;  %p1314_p0 = scmp.ge.s32.totalorder %s1616_s24, 1  ;;  %s1616_s24 = sphi %s1658_s24, %s17_s24  }
   0x2   : > { %p238_p1 = scmp.lt.s32.totalorder %s1616_s24, 3 }
   0x4   : > { %p239_p2 = pnand %p1314_p0, %p238_p1 }
   0x5   : > { %s1315_s28 = sshll.u32 (!%p239_p2), %s1310_s25, 5 }
   0x6   : > { %242 = sbr.rel (%p239_p2) target bundleno = 690 (0x2b2), region = 48  ;;  %p271_p3 = scmp.lt.s32.totalorder (!%p239_p2), %s1315_s28, 63 }
   0xb   : > { %v1584_v0 = vld [vmem:[%s1962_s1 + $0x8] sm:$0xff]   ;;  %v1585_v1 = vld [vmem:[%s1962_s1] sm:$0xff]   ;;  %s1970_s28 = smov (!%p271_p3, %s1315_s28), 63  ;;  %v1602_v2 = vld [vmem:[%s1964_s3 + $0x18] sm:$0xff]   ;;  %vm418_vm0 = vcmask 261120   ;;  %vm715_vm1 = vcmask 523264  }
   0xc   : > { %1456 = vmatprep.subr.bf16.mxu0 %v1584_v0  ;;  %1572 = vmatprep.subr.bf16.mxu1 %v1584_v0  ;;  %s1316_s10 = sshll.u32 %s1970_s28, 2  ;;  %v1603_v9 = vld [vmem:[%s1964_s3 + $0x10] sm:$0xff]   ;;  %v1604_v12 = vld [vmem:[%s1964_s3 + $0x8] sm:$0xff]   ;;  %v1605_v21 = vld [vmem:[%s1964_s3] sm:$0xff]   ;;  %s1318_s11 = sshll.u32 %s1970_s28, 3  ;;  %vm1221_vm2 = vcmask 130048  }
   0xd   : > { %1457 = vmatpush3.bf16.msra.mxu0 %v1584_v0  ;;  %1574 = vmatpush3.bf16.msra.mxu1 %v1584_v0  ;;  %s1681_s13 = scalar_lea.vmem %s1961_s0, %s1316_s10  ;;  %v1606_v22 = vld [vmem:[%s1966_s5 + $0x18] sm:$0xff]   ;;  %v1607_v23 = vld [vmem:[%s1966_s5 + $0x10] sm:$0xff]   ;;  %v1608_v24 = vld [vmem:[%s1966_s5 + $0x8] sm:$0xff]   ;;  %s1860_s16 = scalar_lea.vmem %s1968_s7, %s1318_s11 }
   0xe   : > { %1458 = vmatprep.subr.bf16.mxu0 %v1585_v1  ;;  %1573 = vmatprep.subr.bf16.mxu1 %v1585_v1  ;;  %v1586_v3 = vld [vmem:[%s1681_s13] sm:$0xff]   ;;  %v1587_v4 = vld [vmem:[%s1681_s13 + $0x8] sm:$0xff]   ;;  %v1588_v5 = vld [vmem:[%s1681_s13 + $0x10] sm:$0xff]  }
   0xf   : > { %1460 = vmatprep.mubr.msk.bf16.mxu0 %vm418_vm0, %v1586_v3  ;;  %v1589_v6 = vld [vmem:[%s1681_s13 + $0x18] sm:$0xff]   ;;  %v1590_v7 = vld [vmem:[%s1681_s13 + $0x20] sm:$0xff]   ;;  %v1595_v10 = vld [vmem:[%s1681_s13 + $0x48] sm:$0xff]  }
  0x10   : > { %v1594_v8 = vld [vmem:[%s1681_s13 + $0x40] sm:$0xff]   ;;  %v1596_v11 = vld [vmem:[%s1681_s13 + $0x50] sm:$0xff]   ;;  %v1591_v13 = vld [vmem:[%s1681_s13 + $0x28] sm:$0xff]  }
  0x11   : > { %1459 = vmatpush3.bf16.msra.mxu0 %v1585_v1  ;;  %1575 = vmatpush3.bf16.msra.mxu1 %v1585_v1  ;;  %v1592_v14 = vld [vmem:[%s1681_s13 + $0x30] sm:$0xff]   ;;  %v1597_v15 = vld [vmem:[%s1681_s13 + $0x58] sm:$0xff]   ;;  %v1598_v16 = vld [vmem:[%s1681_s13 + $0x60] sm:$0xff]  }
  0x12   : > { %1492 = vmatprep.subr.bf16.mxu1 %v1602_v2  ;;  %1476 = vmatprep.mubr.msk.bf16.mxu1 %vm418_vm0, %v1594_v8  ;;  %v1593_v17 = vld [vmem:[%s1681_s13 + $0x38] sm:$0xff]   ;;  %v1599_v18 = vld [vmem:[%s1681_s13 + $0x68] sm:$0xff]   ;;  %v1600_v19 = vld [vmem:[%s1681_s13 + $0x70] sm:$0xff]  }
  0x13   : > { %v1601_v20 = vld [vmem:[%s1681_s13 + $0x78] sm:$0xff]   ;;  %1532 = vmatprep.subr.bf16.mxu0 %v1606_v22  ;;  %v1736_v27 = vld [vmem:[%s1963_s2] ss:$0 sm:$0xff] }
  0x14   : > { %1461 = vmatmul.mubr.msk.bf16.vlgmr.msra.gmra.mxu0 %vm418_vm0, %v1587_v4  ;;  %1477 = vmatmul.mubr.msk.bf16.vlgmr.msra.gmra.mxu1 %vm418_vm0, %v1595_v10 }
  0x15   : > { %1464 = vmatprep.mubr.msk.bf16.mxu0 %vm418_vm0, %v1588_v5  ;;  %1480 = vmatprep.mubr.msk.bf16.mxu1 %vm418_vm0, %v1596_v11 }
  0x16   : > { %1493 = vmatpush3.bf16.msra.mxu1 %v1602_v2  ;;  %1533 = vmatpush3.bf16.msra.mxu0 %v1606_v22 }
  0x17   : > { %1494 = vmatprep.subr.bf16.mxu1 %v1603_v9  ;;  %1534 = vmatprep.subr.bf16.mxu0 %v1607_v23 }
  0x1a   : > { %1495 = vmatpush3.bf16.msra.mxu1 %v1603_v9  ;;  %1535 = vmatpush3.bf16.msra.mxu0 %v1607_v23 }
  0x1b   : > { %1496 = vmatprep.subr.bf16.mxu1 %v1604_v12  ;;  %1536 = vmatprep.subr.bf16.mxu0 %v1608_v24 }
  0x1c   : > { %1465 = vmatmul.mubr.msk.bf16.gmra.mxu0 %vm418_vm0, %v1589_v6  ;;  %1481 = vmatmul.mubr.msk.bf16.gmra.mxu1 %vm418_vm0, %v1597_v15 }
  0x1d   : > { %1468 = vmatprep.mubr.msk.bf16.mxu0 %vm418_vm0, %v1590_v7  ;;  %1484 = vmatprep.mubr.msk.bf16.mxu1 %vm418_vm0, %v1598_v16 }
  0x1e   : > { %1497 = vmatpush3.bf16.msra.mxu1 %v1604_v12  ;;  %1537 = vmatpush3.bf16.msra.mxu0 %v1608_v24 }
  0x1f   : > { %1498 = vmatprep.subr.bf16.mxu1 %v1605_v21 }
  0x22   : > { %1499 = vmatpush3.bf16.msra.mxu1 %v1605_v21 }
  0x24   : > { %1469 = vmatmul.mubr.msk.bf16.gmra.mxu0 %vm418_vm0, %v1591_v13  ;;  %1485 = vmatmul.mubr.msk.bf16.gmra.mxu1 %vm418_vm0, %v1599_v18 }
  0x25   : > { %1472 = vmatprep.mubr.msk.bf16.mxu0 %vm418_vm0, %v1592_v14  ;;  %1488 = vmatprep.mubr.msk.bf16.mxu1 %vm418_vm0, %v1600_v19 }
  0x2c   : > { %1473 = vmatmul.mubr.msk.bf16.gmra.mxu0 %vm418_vm0, %v1593_v17  ;;  %1489 = vmatmul.mubr.msk.bf16.gmra.mxu1 %vm418_vm0, %v1601_v20 }
  0xd4   : > { %v1462_v25 = vpop.f32.mrf.mxu0  ;;  %v1742_v36 = vpop.f32.mrf.mxu1 }
  0xd5   : > { %v510_v31 = vadd.f32 %v1462_v25, %v1736_v27 }
  0xd6   : > { %v501_v26 = vpop.f32.mrf.mxu0  ;;  %v565_v41 = vpop.f32.mrf.mxu1 }
  0xd7   : > { %v502_v29 = vadd.f32 %v1736_v27, %v501_v26  ;;  %v630_v39 = vmax.f32 %v510_v31, 0.0  ;;  %v566_v15 = vadd.f32 %v1736_v27, %v565_v41 }
  0xd8   : > { %v1463_v28 = vpop.f32.mrf.mxu0  ;;  %v1744_v45 = vpop.f32.mrf.mxu1 }
  0xd9   : > { %v513_v30 = vadd.f32 %v1463_v28, %v1736_v27  ;;  %v628_v37 = vmax.f32 %v502_v29, 0.0  ;;  %v644_v24 = vmax.f32 %v566_v15, 0.0 }
  0xda   : > { %v504_v32 = vpop.f32.mrf.mxu0  ;;  %v568_v50 = vpop.f32.mrf.mxu1 }
  0xdb   : > { %v505_v33 = vadd.f32 %v1736_v27, %v504_v32  ;;  %v631_v34 = vmax.f32 %v513_v30, 0.0  ;;  %v569_v16 = vadd.f32 %v1736_v27, %v568_v50 }
  0xdc   : > { %v1466_v35 = vpop.f32.mrf.mxu0  ;;  %v1752_v54 = vpop.f32.mrf.mxu1 }
  0xdd   : > { %v629_v38 = vmax.f32 %v505_v33, 0.0  ;;  %v661_v43 = vpack.c.bf16 %v631_v34, %v630_v39  ;;  %v526_v48 = vadd.f32 %v1466_v35, %v1736_v27  ;;  %v645_v26 = vmax.f32 %v569_v16, 0.0 }
  0xde   : > { %v517_v40 = vpop.f32.mrf.mxu0  ;;  %v581_v59 = vpop.f32.mrf.mxu1 }
  0xdf   : > { %v660_v42 = vpack.c.bf16 %v629_v38, %v628_v37  ;;  %v518_v46 = vadd.f32 %v1736_v27, %v517_v40  ;;  %v634_v57 = vmax.f32 %v526_v48, 0.0  ;;  %v668_v34 = vpack.c.bf16 %v645_v26, %v644_v24 }
  0xe0   : > { %v1467_v44 = vpop.f32.mrf.mxu0  ;;  %v1483_v63 = vpop.f32.mrf.mxu1  ;;  %v582_v35 = vadd.f32 %v1736_v27, %v581_v59  ;;  %v574_v38 = vadd.f32 %v1742_v36, %v1736_v27  ;;  %v577_v40 = vadd.f32 %v1744_v45, %v1736_v27  ;;  %v590_v45 = vadd.f32 %v1752_v54, %v1736_v27 }
  0xe1   : > { %v529_v47 = vadd.f32 %v1467_v44, %v1736_v27  ;;  %1500 = vmatprep.mubr.msk.bf16.mxu1 %vm715_vm1, %v660_v42  ;;  %v632_v55 = vmax.f32 %v518_v46, 0.0 }
  0xe2   : > { %v520_v49 = vpop.f32.mrf.mxu0  ;;  %1501 = vmatmul.mubr.msk.bf16.vlgmr.msra.gmra.mxu1 %vm715_vm1, %v661_v43  ;;  %v584_v4 = vpop.f32.mrf.mxu1  ;;  %v648_v42 = vmax.f32 %v582_v35, 0.0  ;;  %v646_v44 = vmax.f32 %v574_v38, 0.0  ;;  %v647_v46 = vmax.f32 %v577_v40, 0.0 }
  0xe3   : > { %v521_v51 = vadd.f32 %v1736_v27, %v520_v49  ;;  %v635_v52 = vmax.f32 %v529_v47, 0.0  ;;  %v585_v37 = vadd.f32 %v1736_v27, %v584_v4 }
  0xe4   : > { %v1470_v53 = vpop.f32.mrf.mxu0  ;;  %v1486_v8 = vpop.f32.mrf.mxu1  ;;  %v669_v50 = vpack.c.bf16 %v647_v46, %v646_v44 }
  0xe5   : > { %v633_v56 = vmax.f32 %v521_v51, 0.0  ;;  %v663_v61 = vpack.c.bf16 %v635_v52, %v634_v57  ;;  %v542_v2 = vadd.f32 %v1470_v53, %v1736_v27  ;;  %v649_v43 = vmax.f32 %v585_v37, 0.0 }
  0xe6   : > { %v533_v58 = vpop.f32.mrf.mxu0  ;;  %v597_v13 = vpop.f32.mrf.mxu1  ;;  %v593_v51 = vadd.f32 %v1483_v63, %v1736_v27  ;;  %v606_v54 = vadd.f32 %v1486_v8, %v1736_v27 }
  0xe7   : > { %v662_v60 = vpack.c.bf16 %v633_v56, %v632_v55  ;;  %v534_v0 = vadd.f32 %v1736_v27, %v533_v58  ;;  %v638_v11 = vmax.f32 %v542_v2, 0.0  ;;  %v670_v48 = vpack.c.bf16 %v649_v43, %v648_v42 }
  0xe8   : > { %v1471_v62 = vpop.f32.mrf.mxu0  ;;  %v1487_v19 = vpop.f32.mrf.mxu1  ;;  %v598_v49 = vadd.f32 %v1736_v27, %v597_v13  ;;  %v650_v56 = vmax.f32 %v590_v45, 0.0  ;;  %v651_v57 = vmax.f32 %v593_v51, 0.0  ;;  %v654_v2 = vmax.f32 %v606_v54, 0.0 }
  0xe9   : > { %v545_v1 = vadd.f32 %v1471_v62, %v1736_v27  ;;  %1504 = vmatprep.mubr.msk.bf16.mxu1 %vm715_vm1, %v662_v60  ;;  %v636_v9 = vmax.f32 %v534_v0, 0.0  ;;  %v609_v63 = vadd.f32 %v1487_v19, %v1736_v27 }
  0xea   : > { %v536_v3 = vpop.f32.mrf.mxu0  ;;  %1505 = vmatmul.mubr.msk.bf16.gmra.mxu1 %vm715_vm1, %v663_v61  ;;  %v600_v29 = vpop.f32.mrf.mxu1  ;;  %v652_v53 = vmax.f32 %v598_v49, 0.0  ;;  %v671_v62 = vpack.c.bf16 %v651_v57, %v650_v56 }
  0xeb   : > { %v537_v5 = vadd.f32 %v1736_v27, %v536_v3  ;;  %v639_v6 = vmax.f32 %v545_v1, 0.0  ;;  %v601_v36 = vadd.f32 %v1736_v27, %v600_v29  ;;  %v655_v3 = vmax.f32 %v609_v63, 0.0 }
  0xec   : > { %v1474_v7 = vpop.f32.mrf.mxu0  ;;  %v1490_v41 = vpop.f32.mrf.mxu1 }
  0xed   : > { %v637_v10 = vmax.f32 %v537_v5, 0.0  ;;  %v665_v17 = vpack.c.bf16 %v639_v6, %v638_v11  ;;  %v558_v22 = vadd.f32 %v1474_v7, %v1736_v27  ;;  %v653_v55 = vmax.f32 %v601_v36, 0.0  ;;  %v1609_v11 = vld [vmem:[%s1966_s5] sm:$0xff]  }
  0xee   : > { %v549_v12 = vpop.f32.mrf.mxu0  ;;  %v613_v47 = vpop.f32.mrf.mxu1  ;;  %v673_v5 = vpack.c.bf16 %v655_v3, %v654_v2  ;;  %v622_v6 = vadd.f32 %v1490_v41, %v1736_v27  ;;  %1538 = vmatprep.subr.bf16.mxu0 %v1609_v11 }
  0xef   : > { %v664_v14 = vpack.c.bf16 %v637_v10, %v636_v9  ;;  %v550_v20 = vadd.f32 %v1736_v27, %v549_v12  ;;  %v642_v32 = vmax.f32 %v558_v22, 0.0  ;;  %v672_v59 = vpack.c.bf16 %v653_v55, %v652_v53  ;;  %1539 = vmatpush3.bf16.msra.mxu0 %v1609_v11 }
  0xf0   : > { %v1475_v18 = vpop.f32.mrf.mxu0  ;;  %v1491_v52 = vpop.f32.mrf.mxu1  ;;  %v614_v60 = vadd.f32 %v1736_v27, %v613_v47  ;;  %v658_v8 = vmax.f32 %v622_v6, 0.0 }
  0xf1   : > { %v561_v21 = vadd.f32 %v1475_v18, %v1736_v27  ;;  %1508 = vmatprep.mubr.msk.bf16.mxu1 %vm715_vm1, %v664_v14  ;;  %v640_v30 = vmax.f32 %v550_v20, 0.0  ;;  %v625_v7 = vadd.f32 %v1491_v52, %v1736_v27 }
  0xf2   : > { %v552_v23 = vpop.f32.mrf.mxu0  ;;  %1509 = vmatmul.mubr.msk.bf16.gmra.mxu1 %vm715_vm1, %v665_v17  ;;  %v616_v58 = vpop.f32.mrf.mxu1  ;;  %v656_v0 = vmax.f32 %v614_v60, 0.0 }
  0xf3   : > { %v553_v25 = vadd.f32 %v1736_v27, %v552_v23  ;;  %v643_v28 = vmax.f32 %v561_v21, 0.0  ;;  %v617_v61 = vadd.f32 %v1736_v27, %v616_v58  ;;  %v659_v9 = vmax.f32 %v625_v7, 0.0  ;;  %v1801_v27 = vld [vmem:[%s1965_s4] ss:$0 sm:$0xff] }
  0xf5   : > { %v641_v31 = vmax.f32 %v553_v25, 0.0  ;;  %v667_v39 = vpack.c.bf16 %v643_v28, %v642_v32  ;;  %v657_v1 = vmax.f32 %v617_v61, 0.0  ;;  %v675_v10 = vpack.c.bf16 %v659_v9, %v658_v8 }
  0xf7   : > { %v666_v33 = vpack.c.bf16 %v641_v31, %v640_v30  ;;  %v674_v4 = vpack.c.bf16 %v657_v1, %v656_v0 }
  0xf9   : > { %1512 = vmatprep.mubr.msk.bf16.mxu1 %vm715_vm1, %v666_v33 }
  0xfa   : > { %1513 = vmatmul.mubr.msk.bf16.gmra.mxu1 %vm715_vm1, %v667_v39 }
  0xfb   : > { %1516 = vmatprep.mubr.msk.bf16.mxu1 %vm715_vm1, %v668_v34 }
 0x102   : > { %1517 = vmatmul.mubr.msk.bf16.gmra.mxu1 %vm715_vm1, %v669_v50 }
 0x103   : > { %1520 = vmatprep.mubr.msk.bf16.mxu1 %vm715_vm1, %v670_v48 }
 0x10a   : > { %1521 = vmatmul.mubr.msk.bf16.gmra.mxu1 %vm715_vm1, %v671_v62 }
 0x10b   : > { %1524 = vmatprep.mubr.msk.bf16.mxu1 %vm715_vm1, %v672_v59 }
 0x112   : > { %1525 = vmatmul.mubr.msk.bf16.gmra.mxu1 %vm715_vm1, %v673_v5 }
 0x113   : > { %1528 = vmatprep.mubr.msk.bf16.mxu1 %vm715_vm1, %v674_v4 }
 0x11a   : > { %1529 = vmatmul.mubr.msk.bf16.gmra.mxu1 %vm715_vm1, %v675_v10 }
 0x1a2   : > { %v1502_v12 = vpop.f32.mrf.mxu1 }
 0x1a3   : > { %v807_v17 = vadd.f32 %v1502_v12, %v1801_v27 }
 0x1a4   : > { %v798_v13 = vpop.f32.mrf.mxu1 }
 0x1a5   : > { %v799_v15 = vadd.f32 %v1801_v27, %v798_v13  ;;  %v927_v24 = vmax.f32 %v807_v17, 0.0 }
 0x1a6   : > { %v1503_v14 = vpop.f32.mrf.mxu1 }
 0x1a7   : > { %v810_v16 = vadd.f32 %v1503_v14, %v1801_v27  ;;  %v925_v22 = vmax.f32 %v799_v15, 0.0 }
 0x1a8   : > { %v801_v18 = vpop.f32.mrf.mxu1 }
 0x1a9   : > { %v802_v19 = vadd.f32 %v1801_v27, %v801_v18  ;;  %v928_v20 = vmax.f32 %v810_v16, 0.0 }
 0x1aa   : > { %v1506_v21 = vpop.f32.mrf.mxu1 }
 0x1ab   : > { %v926_v23 = vmax.f32 %v802_v19, 0.0  ;;  %v958_v28 = vpack.c.bf16 %v928_v20, %v927_v24  ;;  %v823_v32 = vadd.f32 %v1506_v21, %v1801_v27 }
 0x1ac   : > { %v814_v25 = vpop.f32.mrf.mxu1 }
 0x1ad   : > { %v957_v26 = vpack.c.bf16 %v926_v23, %v925_v22  ;;  %v815_v30 = vadd.f32 %v1801_v27, %v814_v25  ;;  %v931_v40 = vmax.f32 %v823_v32, 0.0 }
 0x1ae   : > { %v1507_v29 = vpop.f32.mrf.mxu1 }
 0x1af   : > { %v826_v31 = vadd.f32 %v1507_v29, %v1801_v27  ;;  %1540 = vmatprep.mubr.msk.bf16.mxu0 %vm715_vm1, %v957_v26  ;;  %v929_v38 = vmax.f32 %v815_v30, 0.0 }
 0x1b0   : > { %v817_v33 = vpop.f32.mrf.mxu1  ;;  %1541 = vmatmul.mubr.msk.bf16.vlgmr.msra.gmra.mxu0 %vm715_vm1, %v958_v28 }
 0x1b1   : > { %v818_v34 = vadd.f32 %v1801_v27, %v817_v33  ;;  %v932_v35 = vmax.f32 %v826_v31, 0.0 }
 0x1b2   : > { %v1510_v37 = vpop.f32.mrf.mxu1 }
 0x1b3   : > { %v930_v39 = vmax.f32 %v818_v34, 0.0  ;;  %v960_v43 = vpack.c.bf16 %v932_v35, %v931_v40  ;;  %v839_v48 = vadd.f32 %v1510_v37, %v1801_v27 }
 0x1b4   : > { %v830_v41 = vpop.f32.mrf.mxu1 }
 0x1b5   : > { %v959_v42 = vpack.c.bf16 %v930_v39, %v929_v38  ;;  %v831_v46 = vadd.f32 %v1801_v27, %v830_v41  ;;  %v935_v53 = vmax.f32 %v839_v48, 0.0 }
 0x1b6   : > { %v1511_v44 = vpop.f32.mrf.mxu1 }
 0x1b7   : > { %v842_v47 = vadd.f32 %v1511_v44, %v1801_v27  ;;  %1544 = vmatprep.mubr.msk.bf16.mxu0 %vm715_vm1, %v959_v42  ;;  %v933_v51 = vmax.f32 %v831_v46, 0.0 }
 0x1b8   : > { %v833_v49 = vpop.f32.mrf.mxu1  ;;  %1545 = vmatmul.mubr.msk.bf16.gmra.mxu0 %vm715_vm1, %v960_v43 }
 0x1b9   : > { %v834_v36 = vadd.f32 %v1801_v27, %v833_v49  ;;  %v936_v50 = vmax.f32 %v842_v47, 0.0 }
 0x1ba   : > { %v1514_v45 = vpop.f32.mrf.mxu1 }
 0x1bb   : > { %v934_v52 = vmax.f32 %v834_v36, 0.0  ;;  %v962_v57 = vpack.c.bf16 %v936_v50, %v935_v53  ;;  %v855_v61 = vadd.f32 %v1514_v45, %v1801_v27 }
 0x1bc   : > { %v846_v55 = vpop.f32.mrf.mxu1 }
 0x1bd   : > { %v961_v56 = vpack.c.bf16 %v934_v52, %v933_v51  ;;  %v847_v59 = vadd.f32 %v1801_v27, %v846_v55  ;;  %v939_v3 = vmax.f32 %v855_v61, 0.0 }
 0x1be   : > { %v1515_v58 = vpop.f32.mrf.mxu1 }
 0x1bf   : > { %v858_v60 = vadd.f32 %v1515_v58, %v1801_v27  ;;  %1548 = vmatprep.mubr.msk.bf16.mxu0 %vm715_vm1, %v961_v56  ;;  %v937_v1 = vmax.f32 %v847_v59, 0.0 }
 0x1c0   : > { %v849_v62 = vpop.f32.mrf.mxu1  ;;  %1549 = vmatmul.mubr.msk.bf16.gmra.mxu0 %vm715_vm1, %v962_v57 }
 0x1c1   : > { %v850_v54 = vadd.f32 %v1801_v27, %v849_v62  ;;  %v940_v63 = vmax.f32 %v858_v60, 0.0 }
 0x1c2   : > { %v1518_v0 = vpop.f32.mrf.mxu1 }
 0x1c3   : > { %v938_v2 = vmax.f32 %v850_v54, 0.0  ;;  %v964_v6 = vpack.c.bf16 %v940_v63, %v939_v3  ;;  %v871_v10 = vadd.f32 %v1518_v0, %v1801_v27  ;;  %v1855_v54 = vld [vmem:[%s1967_s6] ss:$0 sm:$0xff] }
 0x1c4   : > { %v862_v4 = vpop.f32.mrf.mxu1 }
 0x1c5   : > { %v963_v5 = vpack.c.bf16 %v938_v2, %v937_v1  ;;  %v863_v8 = vadd.f32 %v1801_v27, %v862_v4  ;;  %v943_v17 = vmax.f32 %v871_v10, 0.0 }
 0x1c6   : > { %v1519_v7 = vpop.f32.mrf.mxu1 }
 0x1c7   : > { %v874_v9 = vadd.f32 %v1519_v7, %v1801_v27  ;;  %1552 = vmatprep.mubr.msk.bf16.mxu0 %vm715_vm1, %v963_v5  ;;  %v941_v15 = vmax.f32 %v863_v8, 0.0 }
 0x1c8   : > { %v865_v11 = vpop.f32.mrf.mxu1  ;;  %1553 = vmatmul.mubr.msk.bf16.gmra.mxu0 %vm715_vm1, %v964_v6 }
 0x1c9   : > { %v866_v12 = vadd.f32 %v1801_v27, %v865_v11  ;;  %v944_v13 = vmax.f32 %v874_v9, 0.0 }
 0x1ca   : > { %v1522_v14 = vpop.f32.mrf.mxu1 }
 0x1cb   : > { %v942_v16 = vmax.f32 %v866_v12, 0.0  ;;  %v966_v20 = vpack.c.bf16 %v944_v13, %v943_v17  ;;  %v887_v24 = vadd.f32 %v1522_v14, %v1801_v27 }
 0x1cc   : > { %v878_v18 = vpop.f32.mrf.mxu1 }
 0x1cd   : > { %v965_v19 = vpack.c.bf16 %v942_v16, %v941_v15  ;;  %v879_v22 = vadd.f32 %v1801_v27, %v878_v18  ;;  %v947_v32 = vmax.f32 %v887_v24, 0.0 }
 0x1ce   : > { %v1523_v21 = vpop.f32.mrf.mxu1 }
 0x1cf   : > { %v890_v23 = vadd.f32 %v1523_v21, %v1801_v27  ;;  %1556 = vmatprep.mubr.msk.bf16.mxu0 %vm715_vm1, %v965_v19  ;;  %v945_v30 = vmax.f32 %v879_v22, 0.0 }
 0x1d0   : > { %v881_v25 = vpop.f32.mrf.mxu1  ;;  %1557 = vmatmul.mubr.msk.bf16.gmra.mxu0 %vm715_vm1, %v966_v20 }
 0x1d1   : > { %v882_v26 = vadd.f32 %v1801_v27, %v881_v25  ;;  %v948_v28 = vmax.f32 %v890_v23, 0.0 }
 0x1d2   : > { %v1526_v29 = vpop.f32.mrf.mxu1 }
 0x1d3   : > { %v946_v31 = vmax.f32 %v882_v26, 0.0  ;;  %v968_v35 = vpack.c.bf16 %v948_v28, %v947_v32  ;;  %v903_v40 = vadd.f32 %v1526_v29, %v1801_v27 }
 0x1d4   : > { %v894_v33 = vpop.f32.mrf.mxu1 }
 0x1d5   : > { %v967_v34 = vpack.c.bf16 %v946_v31, %v945_v30  ;;  %v895_v38 = vadd.f32 %v1801_v27, %v894_v33  ;;  %v951_v48 = vmax.f32 %v903_v40, 0.0 }
 0x1d6   : > { %v1527_v37 = vpop.f32.mrf.mxu1 }
 0x1d7   : > { %v906_v39 = vadd.f32 %v1527_v37, %v1801_v27  ;;  %1560 = vmatprep.mubr.msk.bf16.mxu0 %vm715_vm1, %v967_v34  ;;  %v949_v46 = vmax.f32 %v895_v38, 0.0 }
 0x1d8   : > { %v897_v41 = vpop.f32.mrf.mxu1  ;;  %1561 = vmatmul.mubr.msk.bf16.gmra.mxu0 %vm715_vm1, %v968_v35 }
 0x1d9   : > { %v898_v42 = vadd.f32 %v1801_v27, %v897_v41  ;;  %v952_v43 = vmax.f32 %v906_v39, 0.0 }
 0x1da   : > { %v1530_v44 = vpop.f32.mrf.mxu1 }
 0x1db   : > { %v950_v47 = vmax.f32 %v898_v42, 0.0  ;;  %v970_v50 = vpack.c.bf16 %v952_v43, %v951_v48  ;;  %v919_v53 = vadd.f32 %v1530_v44, %v1801_v27 }
 0x1dc   : > { %v910_v49 = vpop.f32.mrf.mxu1 }
 0x1dd   : > { %v969_v36 = vpack.c.bf16 %v950_v47, %v949_v46  ;;  %v911_v51 = vadd.f32 %v1801_v27, %v910_v49  ;;  %v955_v60 = vmax.f32 %v919_v53, 0.0 }
 0x1de   : > { %v1531_v45 = vpop.f32.mrf.mxu1 }
 0x1df   : > { %v922_v52 = vadd.f32 %v1531_v45, %v1801_v27  ;;  %1564 = vmatprep.mubr.msk.bf16.mxu0 %vm715_vm1, %v969_v36  ;;  %v953_v58 = vmax.f32 %v911_v51, 0.0 }
 0x1e0   : > { %v913_v55 = vpop.f32.mrf.mxu1  ;;  %1565 = vmatmul.mubr.msk.bf16.gmra.mxu0 %vm715_vm1, %v970_v50 }
 0x1e1   : > { %v914_v56 = vadd.f32 %v1801_v27, %v913_v55  ;;  %v956_v57 = vmax.f32 %v922_v52, 0.0 }
 0x1e3   : > { %v954_v59 = vmax.f32 %v914_v56, 0.0  ;;  %v972_v62 = vpack.c.bf16 %v956_v57, %v955_v60 }
 0x1e5   : > { %v971_v61 = vpack.c.bf16 %v954_v59, %v953_v58 }
 0x1e7   : > { %1568 = vmatprep.mubr.msk.bf16.mxu0 %vm715_vm1, %v971_v61 }
 0x1e8   : > { %1569 = vmatmul.mubr.msk.bf16.gmra.mxu0 %vm715_vm1, %v972_v62 }
 0x270   : > { %v1542_v27 = vpop.f32.mrf.mxu0 }
 0x271   : > { %v1103_v63 = vadd.f32 %v1542_v27, %v1855_v54 }
 0x272   : > { %v1094_v0 = vpop.f32.mrf.mxu0 }
 0x273   : > { %1224 = vst.msk [vmem:[%s1860_s16 + $0x10] sm:$0xff] %vm1221_vm2, %v1103_v63  ;;  %v1095_v1 = vadd.f32 %v1855_v54, %v1094_v0 }
 0x274   : > { %v1543_v2 = vpop.f32.mrf.mxu0 }
 0x275   : > { %1222 = vst.msk [vmem:[%s1860_s16] sm:$0xff] %vm1221_vm2, %v1095_v1  ;;  %v1106_v3 = vadd.f32 %v1543_v2, %v1855_v54 }
 0x276   : > { %v1097_v4 = vpop.f32.mrf.mxu0 }
 0x277   : > { %1225 = vst.msk [vmem:[%s1860_s16 + $0x18] sm:$0xff] %vm1221_vm2, %v1106_v3  ;;  %v1098_v5 = vadd.f32 %v1855_v54, %v1097_v4 }
 0x278   : > { %v1546_v6 = vpop.f32.mrf.mxu0 }
 0x279   : > { %1223 = vst.msk [vmem:[%s1860_s16 + $0x8] sm:$0xff] %vm1221_vm2, %v1098_v5  ;;  %v1119_v7 = vadd.f32 %v1546_v6, %v1855_v54 }
 0x27a   : > { %v1110_v8 = vpop.f32.mrf.mxu0 }
 0x27b   : > { %1228 = vst.msk [vmem:[%s1860_s16 + $0x30] sm:$0xff] %vm1221_vm2, %v1119_v7  ;;  %v1111_v9 = vadd.f32 %v1855_v54, %v1110_v8 }
 0x27c   : > { %v1547_v10 = vpop.f32.mrf.mxu0 }
 0x27d   : > { %1226 = vst.msk [vmem:[%s1860_s16 + $0x20] sm:$0xff] %vm1221_vm2, %v1111_v9  ;;  %v1122_v11 = vadd.f32 %v1547_v10, %v1855_v54 }
 0x27e   : > { %v1113_v12 = vpop.f32.mrf.mxu0 }
 0x27f   : > { %1229 = vst.msk [vmem:[%s1860_s16 + $0x38] sm:$0xff] %vm1221_vm2, %v1122_v11  ;;  %v1114_v13 = vadd.f32 %v1855_v54, %v1113_v12 }
 0x280   : > { %v1550_v14 = vpop.f32.mrf.mxu0 }
 0x281   : > { %1227 = vst.msk [vmem:[%s1860_s16 + $0x28] sm:$0xff] %vm1221_vm2, %v1114_v13  ;;  %v1135_v15 = vadd.f32 %v1550_v14, %v1855_v54 }
 0x282   : > { %v1126_v16 = vpop.f32.mrf.mxu0 }
 0x283   : > { %1232 = vst.msk [vmem:[%s1860_s16 + $0x50] sm:$0xff] %vm1221_vm2, %v1135_v15  ;;  %v1127_v17 = vadd.f32 %v1855_v54, %v1126_v16 }
 0x284   : > { %v1551_v18 = vpop.f32.mrf.mxu0 }
 0x285   : > { %1230 = vst.msk [vmem:[%s1860_s16 + $0x40] sm:$0xff] %vm1221_vm2, %v1127_v17  ;;  %v1138_v19 = vadd.f32 %v1551_v18, %v1855_v54 }
 0x286   : > { %v1129_v20 = vpop.f32.mrf.mxu0 }
 0x287   : > { %1233 = vst.msk [vmem:[%s1860_s16 + $0x58] sm:$0xff] %vm1221_vm2, %v1138_v19  ;;  %v1130_v21 = vadd.f32 %v1855_v54, %v1129_v20 }
 0x288   : > { %v1554_v22 = vpop.f32.mrf.mxu0 }
 0x289   : > { %1231 = vst.msk [vmem:[%s1860_s16 + $0x48] sm:$0xff] %vm1221_vm2, %v1130_v21  ;;  %v1151_v23 = vadd.f32 %v1554_v22, %v1855_v54 }
 0x28a   : > { %v1142_v24 = vpop.f32.mrf.mxu0 }
 0x28b   : > { %1236 = vst.msk [vmem:[%s1860_s16 + $0x70] sm:$0xff] %vm1221_vm2, %v1151_v23  ;;  %v1143_v25 = vadd.f32 %v1855_v54, %v1142_v24 }
 0x28c   : > { %v1555_v26 = vpop.f32.mrf.mxu0 }
 0x28d   : > { %1234 = vst.msk [vmem:[%s1860_s16 + $0x60] sm:$0xff] %vm1221_vm2, %v1143_v25  ;;  %v1154_v28 = vadd.f32 %v1555_v26, %v1855_v54 }
 0x28e   : > { %v1145_v29 = vpop.f32.mrf.mxu0 }
 0x28f   : > { %1237 = vst.msk [vmem:[%s1860_s16 + $0x78] sm:$0xff] %vm1221_vm2, %v1154_v28  ;;  %v1146_v30 = vadd.f32 %v1855_v54, %v1145_v29 }
 0x290   : > { %v1558_v31 = vpop.f32.mrf.mxu0 }
 0x291   : > { %1235 = vst.msk [vmem:[%s1860_s16 + $0x68] sm:$0xff] %vm1221_vm2, %v1146_v30  ;;  %v1167_v32 = vadd.f32 %v1558_v31, %v1855_v54 }
 0x292   : > { %v1158_v33 = vpop.f32.mrf.mxu0 }
 0x293   : > { %1240 = vst.msk [vmem:[%s1860_s16 + $0x90] sm:$0xff] %vm1221_vm2, %v1167_v32  ;;  %v1159_v34 = vadd.f32 %v1855_v54, %v1158_v33 }
 0x294   : > { %v1559_v35 = vpop.f32.mrf.mxu0 }
 0x295   : > { %1238 = vst.msk [vmem:[%s1860_s16 + $0x80] sm:$0xff] %vm1221_vm2, %v1159_v34  ;;  %v1170_v37 = vadd.f32 %v1559_v35, %v1855_v54 }
 0x296   : > { %v1161_v38 = vpop.f32.mrf.mxu0 }
 0x297   : > { %1241 = vst.msk [vmem:[%s1860_s16 + $0x98] sm:$0xff] %vm1221_vm2, %v1170_v37  ;;  %v1162_v39 = vadd.f32 %v1855_v54, %v1161_v38 }
 0x298   : > { %v1562_v40 = vpop.f32.mrf.mxu0 }
 0x299   : > { %1239 = vst.msk [vmem:[%s1860_s16 + $0x88] sm:$0xff] %vm1221_vm2, %v1162_v39  ;;  %v1183_v41 = vadd.f32 %v1562_v40, %v1855_v54 }
 0x29a   : > { %v1174_v42 = vpop.f32.mrf.mxu0 }
 0x29b   : > { %1244 = vst.msk [vmem:[%s1860_s16 + $0xb0] sm:$0xff] %vm1221_vm2, %v1183_v41  ;;  %v1175_v43 = vadd.f32 %v1855_v54, %v1174_v42 }
 0x29c   : > { %v1563_v44 = vpop.f32.mrf.mxu0 }
 0x29d   : > { %1242 = vst.msk [vmem:[%s1860_s16 + $0xa0] sm:$0xff] %vm1221_vm2, %v1175_v43  ;;  %v1186_v46 = vadd.f32 %v1563_v44, %v1855_v54 }
 0x29e   : > { %v1177_v47 = vpop.f32.mrf.mxu0 }
 0x29f   : > { %1245 = vst.msk [vmem:[%s1860_s16 + $0xb8] sm:$0xff] %vm1221_vm2, %v1186_v46  ;;  %v1178_v48 = vadd.f32 %v1855_v54, %v1177_v47 }
 0x2a0   : > { %v1566_v49 = vpop.f32.mrf.mxu0 }
 0x2a1   : > { %1243 = vst.msk [vmem:[%s1860_s16 + $0xa8] sm:$0xff] %vm1221_vm2, %v1178_v48  ;;  %v1199_v36 = vadd.f32 %v1566_v49, %v1855_v54 }
 0x2a2   : > { %v1190_v50 = vpop.f32.mrf.mxu0 }
 0x2a3   : > { %1248 = vst.msk [vmem:[%s1860_s16 + $0xd0] sm:$0xff] %vm1221_vm2, %v1199_v36  ;;  %v1191_v45 = vadd.f32 %v1855_v54, %v1190_v50 }
 0x2a4   : > { %v1567_v51 = vpop.f32.mrf.mxu0 }
 0x2a5   : > { %1246 = vst.msk [vmem:[%s1860_s16 + $0xc0] sm:$0xff] %vm1221_vm2, %v1191_v45  ;;  %v1202_v52 = vadd.f32 %v1567_v51, %v1855_v54 }
 0x2a6   : > { %v1193_v53 = vpop.f32.mrf.mxu0 }
 0x2a7   : > { %1249 = vst.msk [vmem:[%s1860_s16 + $0xd8] sm:$0xff] %vm1221_vm2, %v1202_v52  ;;  %v1194_v55 = vadd.f32 %v1855_v54, %v1193_v53 }
 0x2a8   : > { %v1570_v56 = vpop.f32.mrf.mxu0 }
 0x2a9   : > { %1247 = vst.msk [vmem:[%s1860_s16 + $0xc8] sm:$0xff] %vm1221_vm2, %v1194_v55  ;;  %v1215_v57 = vadd.f32 %v1570_v56, %v1855_v54 }
 0x2aa   : > { %v1206_v58 = vpop.f32.mrf.mxu0 }
 0x2ab   : > { %1252 = vst.msk [vmem:[%s1860_s16 + $0xf0] sm:$0xff] %vm1221_vm2, %v1215_v57  ;;  %v1207_v59 = vadd.f32 %v1855_v54, %v1206_v58 }
 0x2ac   : > { %v1571_v60 = vpop.f32.mrf.mxu0 }
 0x2ad   : > { %1250 = vst.msk [vmem:[%s1860_s16 + $0xe0] sm:$0xff] %vm1221_vm2, %v1207_v59  ;;  %v1218_v61 = vadd.f32 %v1571_v60, %v1855_v54 }
 0x2ae   : > { %v1209_v62 = vpop.f32.mrf.mxu0 }
 0x2af   : > { %1253 = vst.msk [vmem:[%s1860_s16 + $0xf8] sm:$0xff] %vm1221_vm2, %v1218_v61  ;;  %v1210_v27 = vadd.f32 %v1855_v54, %v1209_v62 }
 0x2b1   : > { %1251 = vst.msk [vmem:[%s1860_s16 + $0xe8] sm:$0xff] %vm1221_vm2, %v1210_v27 }
 0x2b2 PF: > { %s17_s24 = sadd.s32 1, %s1616_s24  }
 0x2b3   : > { %p14_p4 = scmp.ge.s32.totalorder %s17_s24, 4  }
 0x2b5   :  { %16 = sbr.rel (!%p14_p4) target bundleno = 1 (0x1), region = 78 }

</bundles_post_ra>
